<compile_context>
chip_gen: v6e
topology: v6e:2x2x1
jax: 0.10.0
libtpu: 0.0.40
codegen_flags: <defaults>
</compile_context>

<pallas_src>
import math
from functools import partial

import jax
import jax.numpy as jnp
from jax.experimental import pallas as pl
from jax.experimental.pallas import tpu as pltpu

HIDDEN = 100
LANE = 128
SUBLANE = 8


def _round_up(x: int, m: int) -> int:
    return ((x + m - 1) // m) * m


def _mlp_pnn_kernel(x_ref, w1_ref, b1_ref, w2_ref, b2_ref, w3_ref, b3_ref, o_ref):
    # Cast the x tile to bf16 for the MXU; accumulate in f32.
    xb = x_ref[...].astype(jnp.bfloat16)
    # h1 = relu(x @ W1 + b1)   (f32 accumulator, f32 bias/ReLU)
    h1 = jnp.dot(xb, w1_ref[...], preferred_element_type=jnp.float32) + b1_ref[...]
    h1 = jnp.maximum(h1, 0.0).astype(jnp.bfloat16)
    # h2 = relu(h1 @ W2 + b2)
    h2 = jnp.dot(h1, w2_ref[...], preferred_element_type=jnp.float32) + b2_ref[...]
    h2 = jnp.maximum(h2, 0.0).astype(jnp.bfloat16)
    # out = h2 @ W3 + b3   (classifier, no activation)
    out = jnp.dot(h2, w3_ref[...], preferred_element_type=jnp.float32) + b3_ref[...]
    o_ref[...] = out.astype(o_ref.dtype)


@partial(jax.jit, static_argnames=("tb",))
def mnist_mlp_pnn_forward(x, params, tb: int = 512):
    """Forward pass of MNISTMLP_PNN (old_cols == [] branch).

    x: (B, ...) any trailing shape (flattened row-major, like x.view(-1, num_flat_features(x))).
    params: (w1, b1, w2, b2, w3, b3) in f32; weights stored as (in_features, out_features).
    """
    w1, b1, w2, b2, w3, b3 = params
    batch = x.shape[0]
    x2d = x.reshape(batch, -1)              # keep source dtype; cast per-tile in the kernel
    input_size = x2d.shape[1]
    output_size = w3.shape[1]

    # Lane-aligned padded dims.
    d_pad = _round_up(input_size, LANE)
    h_pad = _round_up(HIDDEN, LANE)
    o_pad = _round_up(output_size, LANE)

    # Batch tile: multiple of 8 sublanes, capped by the (rounded-up) batch.
    tb = max(SUBLANE, _round_up(min(tb, batch), SUBLANE))
    b_pad = _round_up(batch, tb)
    num_tiles = pl.cdiv(b_pad, tb)

    # Zero-pad everything (zero rows/cols leave the real logits unchanged).
    xp = jnp.pad(x2d, ((0, b_pad - batch), (0, d_pad - input_size)))
    w1p = jnp.pad(w1, ((0, d_pad - input_size), (0, h_pad - HIDDEN))).astype(jnp.bfloat16)
    b1p = jnp.pad(b1, ((0, 0), (0, h_pad - HIDDEN)))
    w2p = jnp.pad(w2, ((0, h_pad - HIDDEN), (0, h_pad - HIDDEN))).astype(jnp.bfloat16)
    b2p = jnp.pad(b2, ((0, 0), (0, h_pad - HIDDEN)))
    w3p = jnp.pad(w3, ((0, h_pad - HIDDEN), (0, o_pad - output_size))).astype(jnp.bfloat16)
    b3p = jnp.pad(b3, ((0, 0), (0, o_pad - output_size)))

    resident = lambda shape: pl.BlockSpec(shape, lambda i: (0, 0))

    out_padded = pl.pallas_call(
        _mlp_pnn_kernel,
        out_shape=jax.ShapeDtypeStruct((b_pad, o_pad), jnp.float32),
        grid=(num_tiles,),
        in_specs=[
            pl.BlockSpec((tb, d_pad), lambda i: (i, 0)),   # x tile (pipelined per grid step)
            resident((d_pad, h_pad)),                      # W1 (resident in VMEM)
            resident((1, h_pad)),                          # b1
            resident((h_pad, h_pad)),                      # W2
            resident((1, h_pad)),                          # b2
            resident((h_pad, o_pad)),                      # W3
            resident((1, o_pad)),                          # b3
        ],
        out_specs=pl.BlockSpec((tb, o_pad), lambda i: (i, 0)),
        compiler_params=pltpu.CompilerParams(
            dimension_semantics=("parallel",),
            vmem_limit_bytes=32 << 20,
        ),
    )(xp, w1p, b1p, w2p, b2p, w3p, b3p)

    return out_padded[:batch, :output_size]


def init_params(key, input_size, output_size):
    """Xavier-uniform weights (matching mammoth's `xavier`), zero biases. Deterministic."""
    def xavier_uniform(k, fan_in, fan_out):
        std = math.sqrt(2.0 / (fan_in + fan_out))
        a = math.sqrt(3.0) * std
        # stored as (in_features, out_features) for y = x @ W
        return jax.random.uniform(k, (fan_in, fan_out), jnp.float32, minval=-a, maxval=a)

    k1, k2, k3 = jax.random.split(key, 3)
    w1 = xavier_uniform(k1, input_size, HIDDEN)
    b1 = jnp.zeros((1, HIDDEN), jnp.float32)
    w2 = xavier_uniform(k2, HIDDEN, HIDDEN)
    b2 = jnp.zeros((1, HIDDEN), jnp.float32)
    w3 = xavier_uniform(k3, HIDDEN, output_size)
    b3 = jnp.zeros((1, output_size), jnp.float32)
    return (w1, b1, w2, b2, w3, b3)


def _reference_forward(x, params):
    """Pure-JAX reference with the same bf16-operand / f32-accumulate numerics as the kernel."""
    w1, b1, w2, b2, w3, b3 = params
    bf = jnp.bfloat16
    x2d = x.reshape(x.shape[0], -1)
    h1 = jnp.maximum(
        jnp.dot(x2d.astype(bf), w1.astype(bf), preferred_element_type=jnp.float32) + b1, 0.0)
    h2 = jnp.maximum(
        jnp.dot(h1.astype(bf), w2.astype(bf), preferred_element_type=jnp.float32) + b2, 0.0)
    return jnp.dot(h2.astype(bf), w3.astype(bf), preferred_element_type=jnp.float32) + b3


if __name__ == "__main__":
    key = jax.random.PRNGKey(0)
    kx, kx2, kp = jax.random.split(key, 3)

    # Small NCHW-style input, flattened inside the wrapper: input_size = 4*16*16 = 1024.
    batch, C, H, W = 2, 4, 16, 16
    input_size = C * H * W
    output_size = 10

    x = jax.random.normal(kx, (batch, C, H, W), jnp.float32)
    params = init_params(kp, input_size, output_size)

    out = jax.block_until_ready(mnist_mlp_pnn_forward(x, params))
    ref = _reference_forward(x, params)
    assert out.shape == (batch, output_size), out.shape
    assert jnp.allclose(out, ref, atol=2e-3, rtol=2e-3), "mismatch vs reference (small batch)"

    # Second check: odd batch with a small tile so the grid pipeline (grid > 1) and batch
    # padding/slicing paths are actually exercised.
    batch2 = 37
    x2 = jax.random.normal(kx2, (batch2, C, H, W), jnp.float32)
    out2 = jax.block_until_ready(mnist_mlp_pnn_forward(x2, params, tb=16))
    ref2 = _reference_forward(x2, params)
    assert out2.shape == (batch2, output_size), out2.shape
    assert jnp.allclose(out2, ref2, atol=2e-3, rtol=2e-3), "mismatch vs reference (tiled batch)"

    # TODO(synk): the old_cols / lateral-adaptor branch is not exercised (old_cols is None in
    # __init__ per the reference construction), so only the plain 3-layer MLP path is kernelized.
    print("KERNEL_OK")
</pallas_src>

<mosaic_0001>
module attributes {stable_mosaic.version = 11 : i64} {
  func.func @_mlp_pnn_kernel(%arg0: i32, %arg1: memref<8x1024xf32, #tpu.memory_space<vmem>>, %arg2: memref<1024x128xbf16, #tpu.memory_space<vmem>>, %arg3: memref<1x128xf32, #tpu.memory_space<vmem>>, %arg4: memref<128x128xbf16, #tpu.memory_space<vmem>>, %arg5: memref<1x128xf32, #tpu.memory_space<vmem>>, %arg6: memref<128x128xbf16, #tpu.memory_space<vmem>>, %arg7: memref<1x128xf32, #tpu.memory_space<vmem>>, %arg8: memref<8x128xf32, #tpu.memory_space<vmem>>) attributes {dimension_semantics = [#tpu.dimension_semantics<parallel>], iteration_bounds = array<i64: 1>, scalar_prefetch = 0 : i64, scratch_operands = 0 : i64, tpu.core_type = #tpu.core_type<tc>, window_params = [{transform_indices = @transform_0, window_bounds = array<i64: 8, 1024>}, {pipeline_mode = #tpu.pipeline_mode<synchronous>, transform_indices = @transform_1, window_bounds = array<i64: 1024, 128>}, {pipeline_mode = #tpu.pipeline_mode<synchronous>, transform_indices = @transform_2, window_bounds = array<i64: 1, 128>}, {pipeline_mode = #tpu.pipeline_mode<synchronous>, transform_indices = @transform_3, window_bounds = array<i64: 128, 128>}, {pipeline_mode = #tpu.pipeline_mode<synchronous>, transform_indices = @transform_4, window_bounds = array<i64: 1, 128>}, {pipeline_mode = #tpu.pipeline_mode<synchronous>, transform_indices = @transform_5, window_bounds = array<i64: 128, 128>}, {pipeline_mode = #tpu.pipeline_mode<synchronous>, transform_indices = @transform_6, window_bounds = array<i64: 1, 128>}, {transform_indices = @transform_7, window_bounds = array<i64: 8, 128>}]} {
    %c0 = arith.constant 0 : index
    %c0_0 = arith.constant 0 : index
    %0 = vector.load %arg1[%c0, %c0_0] : memref<8x1024xf32, #tpu.memory_space<vmem>>, vector<8x1024xf32>
    %1 = arith.truncf %0 : vector<8x1024xf32> to vector<8x1024xbf16>
    %c0_1 = arith.constant 0 : index
    %c0_2 = arith.constant 0 : index
    %2 = vector.load %arg2[%c0_1, %c0_2] : memref<1024x128xbf16, #tpu.memory_space<vmem>>, vector<1024x128xbf16>
    %cst = arith.constant dense<0.000000e+00> : vector<8x128xf32>
    %3 = tpu.matmul %1, %2, %cst {dimension_numbers = #tpu.dot_dimension_numbers<[1], [0], [0], [1], [0, 0, 1, 1], [], []>} : vector<8x1024xbf16>, vector<1024x128xbf16>, vector<8x128xf32> -> vector<8x128xf32>
    %c0_3 = arith.constant 0 : index
    %c0_4 = arith.constant 0 : index
    %4 = vector.load %arg3[%c0_3, %c0_4] : memref<1x128xf32, #tpu.memory_space<vmem>>, vector<1x128xf32>
    %5 = vector.broadcast %4 : vector<1x128xf32> to vector<8x128xf32>
    %6 = arith.addf %3, %5 : vector<8x128xf32>
    %cst_5 = arith.constant 0.000000e+00 : f32
    %7 = vector.broadcast %cst_5 : f32 to vector<8x128xf32>
    %8 = arith.maximumf %6, %7 : vector<8x128xf32>
    %9 = arith.truncf %8 : vector<8x128xf32> to vector<8x128xbf16>
    %c0_6 = arith.constant 0 : index
    %c0_7 = arith.constant 0 : index
    %10 = vector.load %arg4[%c0_6, %c0_7] : memref<128x128xbf16, #tpu.memory_space<vmem>>, vector<128x128xbf16>
    %cst_8 = arith.constant dense<0.000000e+00> : vector<8x128xf32>
    %11 = tpu.matmul %9, %10, %cst_8 {dimension_numbers = #tpu.dot_dimension_numbers<[1], [0], [0], [1], [0, 0, 1, 1], [], []>} : vector<8x128xbf16>, vector<128x128xbf16>, vector<8x128xf32> -> vector<8x128xf32>
    %c0_9 = arith.constant 0 : index
    %c0_10 = arith.constant 0 : index
    %12 = vector.load %arg5[%c0_9, %c0_10] : memref<1x128xf32, #tpu.memory_space<vmem>>, vector<1x128xf32>
    %13 = vector.broadcast %12 : vector<1x128xf32> to vector<8x128xf32>
    %14 = arith.addf %11, %13 : vector<8x128xf32>
    %cst_11 = arith.constant 0.000000e+00 : f32
    %15 = vector.broadcast %cst_11 : f32 to vector<8x128xf32>
    %16 = arith.maximumf %14, %15 : vector<8x128xf32>
    %17 = arith.truncf %16 : vector<8x128xf32> to vector<8x128xbf16>
    %c0_12 = arith.constant 0 : index
    %c0_13 = arith.constant 0 : index
    %18 = vector.load %arg6[%c0_12, %c0_13] : memref<128x128xbf16, #tpu.memory_space<vmem>>, vector<128x128xbf16>
    %cst_14 = arith.constant dense<0.000000e+00> : vector<8x128xf32>
    %19 = tpu.matmul %17, %18, %cst_14 {dimension_numbers = #tpu.dot_dimension_numbers<[1], [0], [0], [1], [0, 0, 1, 1], [], []>} : vector<8x128xbf16>, vector<128x128xbf16>, vector<8x128xf32> -> vector<8x128xf32>
    %c0_15 = arith.constant 0 : index
    %c0_16 = arith.constant 0 : index
    %20 = vector.load %arg7[%c0_15, %c0_16] : memref<1x128xf32, #tpu.memory_space<vmem>>, vector<1x128xf32>
    %21 = vector.broadcast %20 : vector<1x128xf32> to vector<8x128xf32>
    %22 = arith.addf %19, %21 : vector<8x128xf32>
    %c0_17 = arith.constant 0 : index
    %c0_18 = arith.constant 0 : index
    %23 = vector.load %arg8[%c0_17, %c0_18] : memref<8x128xf32, #tpu.memory_space<vmem>>, vector<8x128xf32>
    tpu.vector_store %arg8[%c0_17, %c0_18], %22 {strides = array<i32>} : memref<8x128xf32, #tpu.memory_space<vmem>>, vector<8x128xf32>,
    return
  }
  func.func @transform_0(%arg0: i32) -> (i32, i32) {
    %c0_i32 = arith.constant 0 : i32
    %c0_i32_0 = arith.constant 0 : i32
    return %arg0, %c0_i32 : i32, i32
  }
  func.func @transform_1(%arg0: i32) -> (i32, i32) {
    %c0_i32 = arith.constant 0 : i32
    %c0_i32_0 = arith.constant 0 : i32
    %c0_i32_1 = arith.constant 0 : i32
    return %c0_i32, %c0_i32_0 : i32, i32
  }
  func.func @transform_2(%arg0: i32) -> (i32, i32) {
    %c0_i32 = arith.constant 0 : i32
    %c0_i32_0 = arith.constant 0 : i32
    %c0_i32_1 = arith.constant 0 : i32
    return %c0_i32, %c0_i32_0 : i32, i32
  }
  func.func @transform_3(%arg0: i32) -> (i32, i32) {
    %c0_i32 = arith.constant 0 : i32
    %c0_i32_0 = arith.constant 0 : i32
    %c0_i32_1 = arith.constant 0 : i32
    return %c0_i32, %c0_i32_0 : i32, i32
  }
  func.func @transform_4(%arg0: i32) -> (i32, i32) {
    %c0_i32 = arith.constant 0 : i32
    %c0_i32_0 = arith.constant 0 : i32
    %c0_i32_1 = arith.constant 0 : i32
    return %c0_i32, %c0_i32_0 : i32, i32
  }
  func.func @transform_5(%arg0: i32) -> (i32, i32) {
    %c0_i32 = arith.constant 0 : i32
    %c0_i32_0 = arith.constant 0 : i32
    %c0_i32_1 = arith.constant 0 : i32
    return %c0_i32, %c0_i32_0 : i32, i32
  }
  func.func @transform_6(%arg0: i32) -> (i32, i32) {
    %c0_i32 = arith.constant 0 : i32
    %c0_i32_0 = arith.constant 0 : i32
    %c0_i32_1 = arith.constant 0 : i32
    return %c0_i32, %c0_i32_0 : i32, i32
  }
  func.func @transform_7(%arg0: i32) -> (i32, i32) {
    %c0_i32 = arith.constant 0 : i32
    %c0_i32_0 = arith.constant 0 : i32
    return %arg0, %c0_i32 : i32, i32
  }
}

</mosaic_0001>

<bundles_post_ra>
// kernel: mnist_mlp_pnn_forward.1
= control target key start
LH: loop header
LB: loop body
LE: loop exit
PB: predicated region body
PF: predicated region fallthrough
CT: control target
= control target key end

     0   :  { %vm1265_vm0 = vmmov 0   ;;  %s1600_s1 = inlined_call_operand.vmem [shape: bf16[1024,128], index: 1, kind: input, shape index: {}]   ;;  %s1601_s0 = inlined_call_operand.vmem [shape: f32[8,1024], index: 0, kind: input, shape index: {}]   ;;  %s1602_s3 = inlined_call_operand.vmem [shape: bf16[128,128], index: 3, kind: input, shape index: {}]   ;;  %s1603_s5 = inlined_call_operand.vmem [shape: bf16[128,128], index: 5, kind: input, shape index: {}]   ;;  %s1604_s2 = inlined_call_operand.vmem [shape: f32[1,128], index: 2, kind: input, shape index: {}]   ;;  %s1605_s4 = inlined_call_operand.vmem [shape: f32[1,128], index: 4, kind: input, shape index: {}]   ;;  %s1606_s6 = inlined_call_operand.vmem [shape: f32[1,128], index: 6, kind: input, shape index: {}]   ;;  %s1607_s7 = inlined_call_operand.vmem [shape: f32[8,128], index: 7, kind: output, shape index: {}]  }
   0x1   :  { %v1184_v0 = vld [vmem:[%s1600_s1 + $0x78] sm:$0xff]   ;;  %v1188_v4 = vld [vmem:[%s1600_s1 + $0x70] sm:$0xff]   ;;  %v1192_v8 = vld [vmem:[%s1600_s1 + $0x68] sm:$0xff]  }
   0x2   :  { %v1185_v1 = vld [vmem:[%s1600_s1 + $0xf8] sm:$0xff]   ;;  %1036 = vmatprep.subr.bf16.mxu0 %v1184_v0  ;;  %v1189_v5 = vld [vmem:[%s1600_s1 + $0xf0] sm:$0xff]   ;;  %v1193_v9 = vld [vmem:[%s1600_s1 + $0xe8] sm:$0xff]  }
   0x3   :  { %v1186_v2 = vld [vmem:[%s1600_s1 + $0x38] sm:$0xff]   ;;  %1058 = vmatprep.subr.bf16.mxu1 %v1185_v1  ;;  %v1190_v6 = vld [vmem:[%s1600_s1 + $0x30] sm:$0xff]   ;;  %v1194_v10 = vld [vmem:[%s1600_s1 + $0x28] sm:$0xff]  }
   0x4   :  { %v1187_v3 = vld [vmem:[%s1600_s1 + $0xb8] sm:$0xff]   ;;  %1037 = vmatpush3.bf16.msra.mxu0 %v1186_v2  ;;  %v1191_v7 = vld [vmem:[%s1600_s1 + $0xb0] sm:$0xff]   ;;  %v1195_v11 = vld [vmem:[%s1600_s1 + $0xa8] sm:$0xff]  }
   0x5   :  { %1059 = vmatpush3.bf16.msra.mxu1 %v1187_v3  ;;  %1038 = vmatprep.subr.bf16.mxu0 %v1188_v4  ;;  %v1196_v12 = vld [vmem:[%s1600_s1 + $0x60] sm:$0xff]   ;;  %v1200_v16 = vld [vmem:[%s1600_s1 + $0x58] sm:$0xff]   ;;  %v1204_v20 = vld [vmem:[%s1600_s1 + $0x50] sm:$0xff]  }
   0x6   :  { %1060 = vmatprep.subr.bf16.mxu1 %v1189_v5  ;;  %v1197_v13 = vld [vmem:[%s1600_s1 + $0xe0] sm:$0xff]   ;;  %v1201_v17 = vld [vmem:[%s1600_s1 + $0xd8] sm:$0xff]   ;;  %v1205_v21 = vld [vmem:[%s1600_s1 + $0xd0] sm:$0xff]  }
   0x7   :  { %v1198_v14 = vld [vmem:[%s1600_s1 + $0x20] sm:$0xff]   ;;  %v1202_v18 = vld [vmem:[%s1600_s1 + $0x18] sm:$0xff]   ;;  %v1206_v22 = vld [vmem:[%s1600_s1 + $0x10] sm:$0xff]  }
   0x8   :  { %1039 = vmatpush3.bf16.msra.mxu0 %v1190_v6  ;;  %v1199_v15 = vld [vmem:[%s1600_s1 + $0xa0] sm:$0xff]   ;;  %v1203_v19 = vld [vmem:[%s1600_s1 + $0x98] sm:$0xff]   ;;  %v1207_v23 = vld [vmem:[%s1600_s1 + $0x90] sm:$0xff]  }
   0x9   :  { %1061 = vmatpush3.bf16.msra.mxu1 %v1191_v7  ;;  %1040 = vmatprep.subr.bf16.mxu0 %v1192_v8  ;;  %v1208_v24 = vld [vmem:[%s1600_s1 + $0x48] sm:$0xff]   ;;  %v1212_v28 = vld [vmem:[%s1600_s1 + $0x40] sm:$0xff]   ;;  %v30_v33 = vld [vmem:[%s1601_s0 + $0x18] sm:$0xff] }
   0xa   :  { %1062 = vmatprep.subr.bf16.mxu1 %v1193_v9  ;;  %v1209_v25 = vld [vmem:[%s1600_s1 + $0xc8] sm:$0xff]   ;;  %v1213_v29 = vld [vmem:[%s1600_s1 + $0xc0] sm:$0xff]   ;;  %v38_v36 = vpack.c.bf16 %v30_v33, %v30_v33  ;;  %v29_v38 = vld [vmem:[%s1601_s0 + $0x10] sm:$0xff] }
   0xb   :  { %v1210_v26 = vld [vmem:[%s1600_s1 + $0x8] sm:$0xff]   ;;  %v1214_v30 = vld [vmem:[%s1600_s1] sm:$0xff]   ;;  %v37_v39 = vpack.c.bf16 %v29_v38, %v29_v38  ;;  %v1216_v40 = vld [vmem:[%s1600_s1 + $0x178] sm:$0xff]  }
   0xc   :  { %1041 = vmatpush3.bf16.msra.mxu0 %v1194_v10  ;;  %v1211_v27 = vld [vmem:[%s1600_s1 + $0x88] sm:$0xff]   ;;  %v1215_v31 = vld [vmem:[%s1600_s1 + $0x80] sm:$0xff]   ;;  %634 = vmatprep.mubr.bf16.mxu1 %v38_v36  ;;  %v1217_v41 = vld [vmem:[%s1600_s1 + $0x1f8] sm:$0xff]  }
   0xd   :  { %1063 = vmatpush3.bf16.msra.mxu1 %v1195_v11  ;;  %1042 = vmatprep.subr.bf16.mxu0 %v1196_v12  ;;  %v28_v32 = vld [vmem:[%s1601_s0 + $0x8] sm:$0xff]  ;;  %v27_v34 = vld [vmem:[%s1601_s0] sm:$0xff]  ;;  %v1218_v42 = vld [vmem:[%s1600_s1 + $0x138] sm:$0xff]  }
   0xe   :  { %1064 = vmatprep.subr.bf16.mxu1 %v1197_v13  ;;  %v36_v35 = vpack.c.bf16 %v28_v32, %v28_v32  ;;  %v35_v37 = vpack.c.bf16 %v27_v34, %v27_v34  ;;  %v1219_v43 = vld [vmem:[%s1600_s1 + $0x1b8] sm:$0xff]   ;;  %v1220_v44 = vld [vmem:[%s1600_s1 + $0x170] sm:$0xff]   ;;  %v1224_v48 = vld [vmem:[%s1600_s1 + $0x168] sm:$0xff]  }
   0xf   :  { %v1221_v45 = vld [vmem:[%s1600_s1 + $0x1f0] sm:$0xff]   ;;  %v1225_v49 = vld [vmem:[%s1600_s1 + $0x1e8] sm:$0xff]   ;;  %v1228_v52 = vld [vmem:[%s1600_s1 + $0x160] sm:$0xff]  }
  0x10   :  { %1043 = vmatpush3.bf16.msra.mxu0 %v1198_v14  ;;  %594 = vmatprep.mubr.bf16.mxu0 %v36_v35  ;;  %v1222_v46 = vld [vmem:[%s1600_s1 + $0x130] sm:$0xff]   ;;  %v1226_v50 = vld [vmem:[%s1600_s1 + $0x128] sm:$0xff]   ;;  %v1229_v53 = vld [vmem:[%s1600_s1 + $0x1e0] sm:$0xff]  }
  0x11   :  { %1065 = vmatpush3.bf16.msra.mxu1 %v1199_v15  ;;  %1044 = vmatprep.subr.bf16.mxu0 %v1200_v16  ;;  %v1223_v47 = vld [vmem:[%s1600_s1 + $0x1b0] sm:$0xff]   ;;  %v1227_v51 = vld [vmem:[%s1600_s1 + $0x1a8] sm:$0xff]   ;;  %v1230_v54 = vld [vmem:[%s1600_s1 + $0x120] sm:$0xff]   ;;  %v1264_v16 = vmov 0.0  }
  0x12   :  { %1066 = vmatprep.subr.bf16.mxu1 %v1201_v17  ;;  %v1231_v55 = vld [vmem:[%s1600_s1 + $0x1a0] sm:$0xff]   ;;  %v1232_v56 = vld [vmem:[%s1600_s1 + $0x158] sm:$0xff]   ;;  %v1236_v60 = vld [vmem:[%s1600_s1 + $0x150] sm:$0xff]  }
  0x13   :  { %v1233_v57 = vld [vmem:[%s1600_s1 + $0x1d8] sm:$0xff]   ;;  %v1237_v61 = vld [vmem:[%s1600_s1 + $0x1d0] sm:$0xff]   ;;  %v1240_v0 = vld [vmem:[%s1600_s1 + $0x148] sm:$0xff]  }
  0x14   :  { %1045 = vmatpush3.bf16.msra.mxu0 %v1202_v18  ;;  %v1234_v58 = vld [vmem:[%s1600_s1 + $0x118] sm:$0xff]   ;;  %v1238_v62 = vld [vmem:[%s1600_s1 + $0x110] sm:$0xff]   ;;  %v1241_v1 = vld [vmem:[%s1600_s1 + $0x1c8] sm:$0xff]  }
  0x15   :  { %1067 = vmatpush3.bf16.msra.mxu1 %v1203_v19  ;;  %1046 = vmatprep.subr.bf16.mxu0 %v1204_v20  ;;  %v1235_v59 = vld [vmem:[%s1600_s1 + $0x198] sm:$0xff]   ;;  %v1239_v63 = vld [vmem:[%s1600_s1 + $0x190] sm:$0xff]   ;;  %v1242_v2 = vld [vmem:[%s1600_s1 + $0x108] sm:$0xff]  }
  0x16   :  { %1068 = vmatprep.subr.bf16.mxu1 %v1205_v21  ;;  %v1243_v3 = vld [vmem:[%s1600_s1 + $0x188] sm:$0xff]   ;;  %v1244_v4 = vld [vmem:[%s1600_s1 + $0x140] sm:$0xff]   ;;  %v34_v9 = vld [vmem:[%s1601_s0 + $0x38] sm:$0xff] }
  0x17   :  { %v1245_v5 = vld [vmem:[%s1600_s1 + $0x1c0] sm:$0xff]   ;;  %v32_v8 = vld [vmem:[%s1601_s0 + $0x28] sm:$0xff]  ;;  %v42_v11 = vpack.c.bf16 %v34_v9, %v34_v9  ;;  %v33_v13 = vld [vmem:[%s1601_s0 + $0x30] sm:$0xff] }
  0x18   :  { %1047 = vmatpush3.bf16.msra.mxu0 %v1206_v22  ;;  %v1246_v6 = vld [vmem:[%s1600_s1 + $0x100] sm:$0xff]   ;;  %v40_v10 = vpack.c.bf16 %v32_v8, %v32_v8  ;;  %v41_v15 = vpack.c.bf16 %v33_v13, %v33_v13  ;;  %v1248_v17 = vld [vmem:[%s1602_s3 + $0x38] sm:$0xff]   ;;  %v1249_v18 = vld [vmem:[%s1602_s3 + $0x30] sm:$0xff]  }
  0x19   :  { %1069 = vmatpush3.bf16.msra.mxu1 %v1207_v23  ;;  %1048 = vmatprep.subr.bf16.mxu0 %v1208_v24  ;;  %v1247_v7 = vld [vmem:[%s1600_s1 + $0x180] sm:$0xff]   ;;  %v1250_v19 = vld [vmem:[%s1602_s3 + $0x28] sm:$0xff]   ;;  %v1252_v21 = vld [vmem:[%s1602_s3 + $0x18] sm:$0xff]  }
  0x1a   :  { %1070 = vmatprep.subr.bf16.mxu1 %v1209_v25  ;;  %v31_v12 = vld [vmem:[%s1601_s0 + $0x20] sm:$0xff]  ;;  %v1253_v22 = vld [vmem:[%s1602_s3 + $0x10] sm:$0xff]   ;;  %v1254_v23 = vld [vmem:[%s1602_s3 + $0x8] sm:$0xff]  }
  0x1b   :  { %v39_v14 = vpack.c.bf16 %v31_v12, %v31_v12  ;;  %v1251_v20 = vld [vmem:[%s1602_s3 + $0x20] sm:$0xff]   ;;  %v1256_v25 = vld [vmem:[%s1603_s5 + $0x38] sm:$0xff]  }
  0x1c   :  { %1049 = vmatpush3.bf16.msra.mxu0 %v1210_v26  ;;  %v1255_v24 = vld [vmem:[%s1602_s3] sm:$0xff]   ;;  %v1257_v26 = vld [vmem:[%s1603_s5 + $0x30] sm:$0xff]  }
  0x1d   :  { %1071 = vmatpush3.bf16.msra.mxu1 %v1211_v27  ;;  %1050 = vmatprep.subr.bf16.mxu0 %v1212_v28  ;;  %v1258_v27 = vld [vmem:[%s1603_s5 + $0x28] sm:$0xff]   ;;  %v1259_v28 = vld [vmem:[%s1603_s5 + $0x20] sm:$0xff]  }
  0x1e   :  { %1072 = vmatprep.subr.bf16.mxu1 %v1213_v29  ;;  %v1260_v29 = vld [vmem:[%s1603_s5 + $0x18] sm:$0xff]  }
  0x20   :  { %1051 = vmatpush3.bf16.msra.mxu0 %v1214_v30  ;;  %v1261_v30 = vld [vmem:[%s1603_s5 + $0x10] sm:$0xff]  }
  0x21   :  { %1073 = vmatpush3.bf16.msra.mxu1 %v1215_v31  ;;  %1080 = vmatprep.subr.bf16.mxu0 %v1216_v40  ;;  %v953_v40 = vld [vmem:[%s1604_s2] ss:$0 sm:$0xff] }
  0x22   :  { %1102 = vmatprep.subr.bf16.mxu1 %v1217_v41 }
  0x23   :  { %595 = vmatmul.mubr.bf16.vlgmr.msra.gmra.mxu0 %v35_v37 }
  0x24   :  { %635 = vmatmul.mubr.bf16.vlgmr.msra.gmra.mxu1 %v37_v39  ;;  %1081 = vmatpush3.bf16.msra.mxu0 %v1218_v42 }
  0x25   :  { %1103 = vmatpush3.bf16.msra.mxu1 %v1219_v43  ;;  %1082 = vmatprep.subr.bf16.mxu0 %v1220_v44 }
  0x26   :  { %1104 = vmatprep.subr.bf16.mxu1 %v1221_v45  ;;  %674 = vmatprep.mubr.bf16.mxu0 %v40_v10 }
  0x27   :  { %714 = vmatprep.mubr.bf16.mxu1 %v42_v11 }
  0x28   :  { %1083 = vmatpush3.bf16.msra.mxu0 %v1222_v46 }
  0x29   :  { %1105 = vmatpush3.bf16.msra.mxu1 %v1223_v47  ;;  %1084 = vmatprep.subr.bf16.mxu0 %v1224_v48 }
  0x2a   :  { %1106 = vmatprep.subr.bf16.mxu1 %v1225_v49 }
  0x2c   :  { %1085 = vmatpush3.bf16.msra.mxu0 %v1226_v50 }
  0x2d   :  { %1107 = vmatpush3.bf16.msra.mxu1 %v1227_v51  ;;  %1086 = vmatprep.subr.bf16.mxu0 %v1228_v52 }
  0x2e   :  { %1108 = vmatprep.subr.bf16.mxu1 %v1229_v53 }
  0x30   :  { %1087 = vmatpush3.bf16.msra.mxu0 %v1230_v54 }
  0x31   :  { %1109 = vmatpush3.bf16.msra.mxu1 %v1231_v55  ;;  %1088 = vmatprep.subr.bf16.mxu0 %v1232_v56 }
  0x32   :  { %1110 = vmatprep.subr.bf16.mxu1 %v1233_v57 }
  0x34   :  { %1089 = vmatpush3.bf16.msra.mxu0 %v1234_v58  ;;  %v1262_v58 = vld [vmem:[%s1603_s5 + $0x8] sm:$0xff]  }
  0x35   :  { %1111 = vmatpush3.bf16.msra.mxu1 %v1235_v59  ;;  %1090 = vmatprep.subr.bf16.mxu0 %v1236_v60  ;;  %v1263_v59 = vld [vmem:[%s1603_s5] sm:$0xff]  }
  0x36   :  { %1112 = vmatprep.subr.bf16.mxu1 %v1237_v61  ;;  %v1018_v60 = vld [vmem:[%s1605_s4] ss:$0 sm:$0xff] }
  0x38   :  { %1091 = vmatpush3.bf16.msra.mxu0 %v1238_v62 }
  0x39   :  { %1113 = vmatpush3.bf16.msra.mxu1 %v1239_v63  ;;  %1092 = vmatprep.subr.bf16.mxu0 %v1240_v0 }
  0x3a   :  { %1114 = vmatprep.subr.bf16.mxu1 %v1241_v1 }
  0x3c   :  { %1093 = vmatpush3.bf16.msra.mxu0 %v1242_v2 }
  0x3d   :  { %1115 = vmatpush3.bf16.msra.mxu1 %v1243_v3  ;;  %1094 = vmatprep.subr.bf16.mxu0 %v1244_v4  ;;  %v1027_v4 = vld [vmem:[%s1606_s6] ss:$0 sm:$0xff] }
  0x3e   :  { %1116 = vmatprep.subr.bf16.mxu1 %v1245_v5 }
  0x40   :  { %1095 = vmatpush3.bf16.msra.mxu0 %v1246_v6 }
  0x41   :  { %1117 = vmatpush3.bf16.msra.mxu1 %v1247_v7  ;;  %1142 = vmatprep.subr.bf16.mxu0 %v1264_v16 }
  0x42   :  { %1162 = vmatprep.subr.bf16.mxu1 %v1264_v16 }
  0x43   :  { %675 = vmatmul.mubr.bf16.vlgmr.msra.gmra.mxu0 %v39_v14 }
  0x44   :  { %715 = vmatmul.mubr.bf16.vlgmr.msra.gmra.mxu1 %v41_v15  ;;  %1143 = vmatpush3.bf16.msra.mxu0 %v1248_v17 }
  0x45   :  { %1144 = vmatprep.subr.bf16.mxu0 %v1264_v16  ;;  %1158 = vmatprep.mubr.msk.bf16.mxu0 %vm1265_vm0, %v1264_v16 }
  0x46   :  { %1178 = vmatprep.mubr.msk.bf16.mxu1 %vm1265_vm0, %v1264_v16  ;;  %1163 = vmatpush3.bf16.msra.mxu1 %v1256_v25 }
  0x47   :  { %1164 = vmatprep.subr.bf16.mxu1 %v1264_v16 }
  0x48   :  { %1145 = vmatpush3.bf16.msra.mxu0 %v1249_v18 }
  0x49   :  { %1146 = vmatprep.subr.bf16.mxu0 %v1264_v16 }
  0x4a   :  { %1165 = vmatpush3.bf16.msra.mxu1 %v1257_v26 }
  0x4b   :  { %1166 = vmatprep.subr.bf16.mxu1 %v1264_v16 }
  0x4c   :  { %1147 = vmatpush3.bf16.msra.mxu0 %v1250_v19 }
  0x4d   :  { %1148 = vmatprep.subr.bf16.mxu0 %v1264_v16 }
  0x4e   :  { %1167 = vmatpush3.bf16.msra.mxu1 %v1258_v27 }
  0x4f   :  { %1168 = vmatprep.subr.bf16.mxu1 %v1264_v16 }
  0x50   :  { %1149 = vmatpush3.bf16.msra.mxu0 %v1251_v20 }
  0x51   :  { %1150 = vmatprep.subr.bf16.mxu0 %v1264_v16 }
  0x52   :  { %1169 = vmatpush3.bf16.msra.mxu1 %v1259_v28 }
  0x53   :  { %1170 = vmatprep.subr.bf16.mxu1 %v1264_v16 }
  0x54   :  { %1151 = vmatpush3.bf16.msra.mxu0 %v1252_v21 }
  0x55   :  { %1152 = vmatprep.subr.bf16.mxu0 %v1264_v16 }
  0x56   :  { %1171 = vmatpush3.bf16.msra.mxu1 %v1260_v29 }
  0x57   :  { %1172 = vmatprep.subr.bf16.mxu1 %v1264_v16 }
  0x58   :  { %1153 = vmatpush3.bf16.msra.mxu0 %v1253_v22 }
  0x59   :  { %1154 = vmatprep.subr.bf16.mxu0 %v1264_v16 }
  0x5a   :  { %1173 = vmatpush3.bf16.msra.mxu1 %v1261_v30 }
  0x5b   :  { %1174 = vmatprep.subr.bf16.mxu1 %v1264_v16 }
  0x5c   :  { %1155 = vmatpush3.bf16.msra.mxu0 %v1254_v23 }
  0x5d   :  { %1156 = vmatprep.subr.bf16.mxu0 %v1264_v16 }
  0x5e   :  { %1175 = vmatpush3.bf16.msra.mxu1 %v1262_v58 }
  0x5f   :  { %1176 = vmatprep.subr.bf16.mxu1 %v1264_v16 }
  0x60   :  { %1157 = vmatpush3.bf16.msra.mxu0 %v1255_v24 }
  0x62   :  { %1177 = vmatpush3.bf16.msra.mxu1 %v1263_v59 }
  0xe3   :  { %v1052_v31 = vpop.f32.mrf.mxu0 }
  0xe4   :  { %v1074_v32 = vpop.f32.mrf.mxu1 }
  0xe5   :  { %v1053_v33 = vpop.f32.mrf.mxu0 }
  0xe6   :  { %v1075_v34 = vpop.f32.mrf.mxu1  ;;  %v1054_v39 = vadd.f32 %v1053_v33, %v1052_v31 }
  0xe7   :  { %v1055_v35 = vpop.f32.mrf.mxu0  ;;  %v1076_v42 = vadd.f32 %v1075_v34, %v1074_v32 }
  0xe8   :  { %v1077_v36 = vpop.f32.mrf.mxu1  ;;  %v597_v41 = vadd.f32 %v1054_v39, %v953_v40 }
  0xe9   :  { %v1056_v37 = vpop.f32.mrf.mxu0 }
  0xea   :  { %v1078_v38 = vpop.f32.mrf.mxu1  ;;  %v637_v46 = vadd.f32 %v1076_v42, %v597_v41 }
 0x103   :  { %v1096_v43 = vpop.f32.mrf.mxu0 }
 0x104   :  { %v1118_v44 = vpop.f32.mrf.mxu1 }
 0x105   :  { %v1097_v45 = vpop.f32.mrf.mxu0 }
 0x106   :  { %v1098_v47 = vadd.f32 %v1097_v45, %v1096_v43  ;;  %v1119_v48 = vpop.f32.mrf.mxu1 }
 0x107   :  { %v1099_v49 = vpop.f32.mrf.mxu0  ;;  %v1120_v51 = vadd.f32 %v1119_v48, %v1118_v44 }
 0x108   :  { %v677_v50 = vadd.f32 %v1098_v47, %v637_v46  ;;  %v1121_v52 = vpop.f32.mrf.mxu1 }
 0x109   :  { %v1100_v53 = vpop.f32.mrf.mxu0 }
 0x10a   :  { %v717_v54 = vadd.f32 %v1120_v51, %v677_v50  ;;  %v1122_v55 = vpop.f32.mrf.mxu1 }
 0x10c   :  { %v722_v56 = vmax.f32 %v717_v54, 0.0 }
 0x10e   :  { %v723_v57 = vpack.c.bf16 %v722_v56, %v722_v56 }
 0x110   :  { %1159 = vmatmul.mubr.bf16.vlgmr.msra.gmra.mxu0 %v723_v57 }
 0x1d0   :  { %v829_v61 = vpop.f32.mrf.mxu0 }
 0x1d1   :  { %v830_v62 = vadd.f32 %v1018_v60, %v829_v61 }
 0x1d2   :  { %v1160_v63 = vpop.f32.mrf.mxu0 }
 0x1d3   :  { %v835_v0 = vmax.f32 %v830_v62, 0.0 }
 0x1d4   :  { %v832_v1 = vpop.f32.mrf.mxu0 }
 0x1d5   :  { %v836_v2 = vpack.c.bf16 %v835_v0, %v835_v0 }
 0x1d6   :  { %v1161_v3 = vpop.f32.mrf.mxu0 }
 0x1d7   :  { %1179 = vmatmul.mubr.bf16.vlgmr.msra.gmra.mxu1 %v836_v2 }
 0x297   :  { %v942_v5 = vpop.f32.mrf.mxu1 }
 0x298   :  { %v943_v6 = vadd.f32 %v1027_v4, %v942_v5 }
 0x299   :  { %v1180_v7 = vpop.f32.mrf.mxu1 }
 0x29a   :  { %948 = vst [vmem:[%s1607_s7] sm:$0xff] %v943_v6 }
 0x29b   :  { %v945_v8 = vpop.f32.mrf.mxu1 }
 0x29d   :  { %v1181_v9 = vpop.f32.mrf.mxu1 }

</bundles_post_ra>
